<compile_context>
chip_gen: v7x
topology: tpu7x:2x2x1
jax: 0.10.0
libtpu: 0.0.40
codegen_flags: <defaults>
</compile_context>

<pallas_src>
import functools

import jax
import jax.numpy as jnp
from jax import lax
from jax.experimental import pallas as pl
from jax.experimental.pallas import tpu as pltpu

L2_SCALE = 0.4     # module default l2_scale
VARIANCE = 1.0     # module default variance
KERNEL_EPS = 0.01  # gaussian_kernel eps


def _rbf_tile_kernel(xr_ref, xc_ref, o_ref, *, inv_scale, variance, eps2):
    """One (TS, TS) tile of the RBF kernel matrix for one batch element.

    xr_ref: (TS, D) rows block, xc_ref: (TS, D) cols block, o_ref: (TS, TS).
    """
    xr = xr_ref[...].astype(jnp.float32) * inv_scale
    xc = xc_ref[...].astype(jnp.float32) * inv_scale

    # ||xi - xj||^2 = ||xi||^2 + ||xj||^2 - 2 xi.xj  (gram matrix on the MXU).
    sq_r = jnp.sum(xr * xr, axis=-1, keepdims=True)            # (TS, 1)
    sq_c = jnp.sum(xc * xc, axis=-1, keepdims=True)            # (TS, 1)
    gram = lax.dot_general(
        xr, xc,
        dimension_numbers=(((1,), (1,)), ((), ())),            # contract D, no transpose
        preferred_element_type=jnp.float32,
    )                                                          # (TS, TS)
    norm = jnp.maximum(sq_r + sq_c.T - 2.0 * gram, 0.0)        # clamp tiny negatives
    o_ref[...] = (variance * jnp.exp(-0.5 * norm)).astype(o_ref.dtype)

    # kernel += eps^2 * eye(N): only diagonal output blocks touch the diagonal.
    @pl.when(pl.program_id(1) == pl.program_id(2))
    def _():
        tm, tn = o_ref.shape
        row = lax.broadcasted_iota(jnp.int32, (tm, tn), 0)
        col = lax.broadcasted_iota(jnp.int32, (tm, tn), 1)
        o_ref[...] = o_ref[...] + jnp.where(row == col, eps2, 0.0).astype(o_ref.dtype)


def _pick_tile(n, max_tile=512):
    """Largest multiple of 128 that divides n, capped at max_tile; else n."""
    if n % 128 == 0:
        t = min(max_tile, n)
        while n % t:
            t -= 128
        return t
    return n  # full-extent block is always a legal BlockSpec


def gaussian_kernel_pallas(x, *, l2_scale=L2_SCALE, variance=VARIANCE,
                           eps=KERNEL_EPS, max_tile=512):
    """gaussian_kernel(x, x): (B, N, D) -> (B, N, N)."""
    batch, num_points, x_dim = x.shape
    ts = _pick_tile(num_points, max_tile)
    n_blocks = num_points // ts

    kernel = functools.partial(
        _rbf_tile_kernel,
        inv_scale=float(1.0 / l2_scale),
        variance=float(variance),
        eps2=float(eps) ** 2,
    )
    x = x.astype(jnp.float32)
    return pl.pallas_call(
        kernel,
        out_shape=jax.ShapeDtypeStruct((batch, num_points, num_points), jnp.float32),
        grid_spec=pltpu.PrefetchScalarGridSpec(
            num_scalar_prefetch=0,
            grid=(batch, n_blocks, n_blocks),
            in_specs=[
                pl.BlockSpec((None, ts, x_dim), lambda b, i, j: (b, i, 0)),  # row block
                pl.BlockSpec((None, ts, x_dim), lambda b, i, j: (b, j, 0)),  # col block
            ],
            out_specs=pl.BlockSpec((None, ts, ts), lambda b, i, j: (b, i, j)),
        ),
        compiler_params=pltpu.CompilerParams(
            dimension_semantics=("parallel", "parallel", "parallel"),
        ),
    )(x, x)


def gp_predict(x, y_dim=1):
    """GaussianProcess.predict for the untrained (prior) case."""
    batch, num_points, _ = x.shape
    y_mean = jnp.zeros((batch, num_points, y_dim), dtype=jnp.float32)
    y_cov = gaussian_kernel_pallas(x)
    return y_mean, y_cov
    # TODO(synk): posterior branch (fit + cholesky_solve) and sample() are not
    # part of forward() for a fresh module and are left to standard JAX linalg.


def gp_forward(x):
    """GaussianProcess.forward: returns y_mean only (prior mean == zeros)."""
    y_mean, _ = gp_predict(x)
    return y_mean


def _reference_kernel(x, l2_scale=L2_SCALE, variance=VARIANCE, eps=KERNEL_EPS):
    """Pure-JAX reference of gaussian_kernel(x, x) (diff-based formula)."""
    diff = x[:, None, :, :] - x[:, :, None, :]
    k = variance * jnp.exp(-0.5 * jnp.sum((diff / l2_scale) ** 2, axis=-1))
    n = x.shape[1]
    return k + (eps ** 2) * jnp.eye(n, dtype=k.dtype)[None]


if __name__ == "__main__":
    key = jax.random.PRNGKey(0)

    # Small-N path (full (N, N) block per batch element): module-implied shapes.
    batch, num_points, x_dim = 2, 16, 8
    x = jax.random.normal(key, (batch, num_points, x_dim), dtype=jnp.float32)

    y_mean, y_cov = gp_predict(x)
    y_mean = jax.block_until_ready(y_mean)
    y_cov = jax.block_until_ready(y_cov)

    assert y_mean.shape == (batch, num_points, 1)
    assert float(jnp.max(jnp.abs(y_mean))) == 0.0
    ref = _reference_kernel(x)
    err = float(jnp.max(jnp.abs(y_cov - ref)))
    assert jnp.allclose(y_cov, ref, atol=1e-4), err

    # Tiled path (2x2 blocks of 128): exercises off-diagonal blocks and the
    # diagonal-only jitter gate.
    key2 = jax.random.PRNGKey(0)
    x2 = jax.random.normal(key2, (1, 256, 4), dtype=jnp.float32)
    y_cov2 = jax.block_until_ready(gaussian_kernel_pallas(x2, max_tile=128))
    ref2 = _reference_kernel(x2)
    err2 = float(jnp.max(jnp.abs(y_cov2 - ref2)))
    assert jnp.allclose(y_cov2, ref2, atol=1e-4), err2

    # forward() returns the prior mean only.
    fwd = jax.block_until_ready(gp_forward(x))
    assert fwd.shape == (batch, num_points, 1)

    print("KERNEL_OK")
</pallas_src>

<mosaic_0001>
module attributes {stable_mosaic.version = 11 : i64} {
  func.func @_rbf_tile_kernel(%arg0: i32, %arg1: i32, %arg2: i32, %arg3: memref<1x16x8xf32, #tpu.memory_space<vmem>>, %arg4: memref<1x16x8xf32, #tpu.memory_space<vmem>>, %arg5: memref<1x16x16xf32, #tpu.memory_space<vmem>>) attributes {dimension_semantics = [#tpu.dimension_semantics<parallel>, #tpu.dimension_semantics<parallel>, #tpu.dimension_semantics<parallel>], iteration_bounds = array<i64: 2, 1, 1>, scalar_prefetch = 0 : i64, scratch_operands = 0 : i64, tpu.core_type = #tpu.core_type<tc>, window_params = [{transform_indices = @transform_0, window_bounds = array<i64: 1, 16, 8>}, {transform_indices = @transform_1, window_bounds = array<i64: 1, 16, 8>}, {transform_indices = @transform_2, window_bounds = array<i64: 1, 16, 16>}]} {
    %c0 = arith.constant 0 : index
    %c0_0 = arith.constant 0 : index
    %c0_1 = arith.constant 0 : index
    %0 = vector.load %arg3[%c0, %c0_0, %c0_1] : memref<1x16x8xf32, #tpu.memory_space<vmem>>, vector<1x16x8xf32>
    %1 = vector.shape_cast %0 : vector<1x16x8xf32> to vector<16x8xf32>
    %cst = arith.constant 2.500000e+00 : f32
    %2 = vector.broadcast %cst : f32 to vector<16x8xf32>
    %3 = arith.mulf %1, %2 : vector<16x8xf32>
    %c0_2 = arith.constant 0 : index
    %c0_3 = arith.constant 0 : index
    %c0_4 = arith.constant 0 : index
    %4 = vector.load %arg4[%c0_2, %c0_3, %c0_4] : memref<1x16x8xf32, #tpu.memory_space<vmem>>, vector<1x16x8xf32>
    %5 = vector.shape_cast %4 : vector<1x16x8xf32> to vector<16x8xf32>
    %cst_5 = arith.constant 2.500000e+00 : f32
    %6 = vector.broadcast %cst_5 : f32 to vector<16x8xf32>
    %7 = arith.mulf %5, %6 : vector<16x8xf32>
    %8 = arith.mulf %3, %3 : vector<16x8xf32>
    %cst_6 = arith.constant dense<0.000000e+00> : vector<16xf32>
    %9 = vector.multi_reduction <add>, %8, %cst_6 [1] : vector<16x8xf32> to vector<16xf32>
    %10 = vector.shape_cast %9 : vector<16xf32> to vector<16x1xf32>
    %11 = arith.mulf %7, %7 : vector<16x8xf32>
    %cst_7 = arith.constant dense<0.000000e+00> : vector<16xf32>
    %12 = vector.multi_reduction <add>, %11, %cst_7 [1] : vector<16x8xf32> to vector<16xf32>
    %13 = vector.shape_cast %12 : vector<16xf32> to vector<16x1xf32>
    %cst_8 = arith.constant dense<0.000000e+00> : vector<16x16xf32>
    %14 = tpu.matmul %3, %7, %cst_8 {dimension_numbers = #tpu.dot_dimension_numbers<[1], [1], [0], [0], [0, 0, 1, 0], [], []>} : vector<16x8xf32>, vector<16x8xf32>, vector<16x16xf32> -> vector<16x16xf32>
    %15 = tpu.transpose %13, [1, 0] : vector<16x1xf32> -> vector<1x16xf32>
    %16 = vector.broadcast %10 : vector<16x1xf32> to vector<16x16xf32>
    %17 = vector.broadcast %15 : vector<1x16xf32> to vector<16x16xf32>
    %18 = arith.addf %16, %17 : vector<16x16xf32>
    %cst_9 = arith.constant 2.000000e+00 : f32
    %19 = vector.broadcast %cst_9 : f32 to vector<16x16xf32>
    %20 = arith.mulf %19, %14 : vector<16x16xf32>
    %21 = arith.subf %18, %20 : vector<16x16xf32>
    %cst_10 = arith.constant 0.000000e+00 : f32
    %22 = vector.broadcast %cst_10 : f32 to vector<16x16xf32>
    %23 = arith.maximumf %21, %22 : vector<16x16xf32>
    %cst_11 = arith.constant -5.000000e-01 : f32
    %24 = vector.broadcast %cst_11 : f32 to vector<16x16xf32>
    %25 = arith.mulf %24, %23 : vector<16x16xf32>
    %26 = math.exp %25 : vector<16x16xf32>
    %cst_12 = arith.constant 1.000000e+00 : f32
    %27 = vector.broadcast %cst_12 : f32 to vector<16x16xf32>
    %28 = arith.mulf %27, %26 : vector<16x16xf32>
    %c0_13 = arith.constant 0 : index
    %c0_14 = arith.constant 0 : index
    %c0_15 = arith.constant 0 : index
    %29 = vector.load %arg5[%c0_13, %c0_14, %c0_15] : memref<1x16x16xf32, #tpu.memory_space<vmem>>, vector<1x16x16xf32>
    %30 = vector.shape_cast %29 : vector<1x16x16xf32> to vector<16x16xf32>
    %31 = vector.shape_cast %28 : vector<16x16xf32> to vector<1x16x16xf32>
    tpu.vector_store %arg5[%c0_13, %c0_14, %c0_15], %31 {strides = array<i32>} : memref<1x16x16xf32, #tpu.memory_space<vmem>>, vector<1x16x16xf32>,
    %32 = arith.cmpi eq, %arg1, %arg2 : i32
    %33 = arith.extui %32 : i1 to i32
    %c0_i32 = arith.constant 0 : i32
    %34 = arith.cmpi ne, %33, %c0_i32 : i32
    scf.if %34 {
      %35 = tpu.iota {dimensions = array<i32: 0>} : vector<16x16xi32>
      %36 = tpu.iota {dimensions = array<i32: 1>} : vector<16x16xi32>
      %c0_16 = arith.constant 0 : index
      %c0_17 = arith.constant 0 : index
      %c0_18 = arith.constant 0 : index
      %37 = vector.load %arg5[%c0_16, %c0_17, %c0_18] : memref<1x16x16xf32, #tpu.memory_space<vmem>>, vector<1x16x16xf32>
      %38 = vector.shape_cast %37 : vector<1x16x16xf32> to vector<16x16xf32>
      %39 = arith.cmpi eq, %35, %36 : vector<16x16xi32>
      %cst_19 = arith.constant 9.99999974E-5 : f32
      %cst_20 = arith.constant 0.000000e+00 : f32
      %40 = vector.broadcast %cst_19 : f32 to vector<16x16xf32>
      %41 = vector.broadcast %cst_20 : f32 to vector<16x16xf32>
      %42 = arith.select %39, %40, %41 : vector<16x16xi1>, vector<16x16xf32>
      %43 = arith.addf %38, %42 : vector<16x16xf32>
      %c0_21 = arith.constant 0 : index
      %c0_22 = arith.constant 0 : index
      %c0_23 = arith.constant 0 : index
      %44 = vector.load %arg5[%c0_21, %c0_22, %c0_23] : memref<1x16x16xf32, #tpu.memory_space<vmem>>, vector<1x16x16xf32>
      %45 = vector.shape_cast %44 : vector<1x16x16xf32> to vector<16x16xf32>
      %46 = vector.shape_cast %43 : vector<16x16xf32> to vector<1x16x16xf32>
      tpu.vector_store %arg5[%c0_21, %c0_22, %c0_23], %46 {strides = array<i32>} : memref<1x16x16xf32, #tpu.memory_space<vmem>>, vector<1x16x16xf32>,
    } else {
    }
    return
  }
  func.func @transform_0(%arg0: i32, %arg1: i32, %arg2: i32) -> (i32, i32, i32) {
    %c0_i32 = arith.constant 0 : i32
    %c0_i32_0 = arith.constant 0 : i32
    return %arg0, %arg1, %c0_i32 : i32, i32, i32
  }
  func.func @transform_1(%arg0: i32, %arg1: i32, %arg2: i32) -> (i32, i32, i32) {
    %c0_i32 = arith.constant 0 : i32
    %c0_i32_0 = arith.constant 0 : i32
    return %arg0, %arg2, %c0_i32 : i32, i32, i32
  }
  func.func @transform_2(%arg0: i32, %arg1: i32, %arg2: i32) -> (i32, i32, i32) {
    %c0_i32 = arith.constant 0 : i32
    return %arg0, %arg1, %arg2 : i32, i32, i32
  }
}

</mosaic_0001>

<bundles_post_ra>
// kernel: tpu_custom_call.1
= control target key start
LH: loop header
LB: loop body
LE: loop exit
PB: predicated region body
PF: predicated region fallthrough
CT: control target
= control target key end

     0   :  { %7 = vsyncpa [#allocation3], 0  ;;  %s850_s0 = inlined_call_operand.vmem [shape: f32[2,16,8], index: 0, kind: input, shape index: {}]   ;;  %s851_s1 = inlined_call_operand.vmem [shape: f32[2,16,8], index: 1, kind: input, shape index: {}]   ;;  %s852_s2 = inlined_call_operand.hbm [shape: f32[2,16,16], index: 2, kind: output, shape index: {}]  }
   0x1   :  { %9 = vsyncpa [#allocation3 + $0x1], 0  ;;  %s720_s9 = smov 0   ;;  %s722_s10 = smov 0  }
   0x2   :  { %s724_s11 = smov 0   ;;  %s726_s12 = smov 0  }
   0x3   :  { %s728_s13 = smov 0   ;;  %s730_s14 = smov 0  }
   0x4 LB: > { %s520_s15 = sadd.s32 4294967295, %s699_s14   ;;  %s521_s16 = sadd.s32 4294967294, %s699_s14   ;;  %s699_s14 = sphi %s730_s14, %s15_s14   ;;  %s695_s13 = sphi %s728_s13, %s859_s13   ;;  %s691_s12 = sphi %s726_s12, %s858_s12   ;;  %s687_s11 = sphi %s724_s11, %s857_s11   ;;  %s683_s10 = sphi %s722_s10, %s856_s10   ;;  %s679_s9 = sphi %s720_s9, %s855_s9  }
   0x5   : > { %s34_s17 = sadd.s32 1, %s695_s13  ;;  %s101_s18 = sadd.s32 1, %s687_s11 }
   0x6   : > { %p36_p0 = scmp.ge.s32.totalorder %s34_s17, 2  ;;  %p111_p1 = scmp.ne.s32.totalorder %s687_s11, %s683_s10 }
   0x7   : > { %p112_p2 = scmp.eq.s32.totalorder %s520_s15, 1  ;;  %p117_p3 = scmp.ne.s32.totalorder %s683_s10, %s679_s9 }
   0x8   : > { %s861_s17 = smov (%p36_p0, %s34_s17), 0  ;;  %p118_p5 = scmp.eq.s32.totalorder %s521_s16, 1 }
   0x9   : > { %p760_p4 = por %p112_p2, %p111_p1  ;;  %s94_s20 = ssub.s32 %s695_s13, %s861_s17 }
   0xa   : > { %p524_p6 = scmp.ge.s32.totalorder %s699_s14, 1  ;;  %p99_p7 = scmp.eq.s32.totalorder %s94_s20, 0 }
   0xb   : > { %p767_p8 = por %p118_p5, %p117_p3  ;;  %p162_p9 = scmp.lt.s32.totalorder %s699_s14, 3 }
   0xc   : > { %s773_s22 = scalar_select %p99_p7, %s687_s11, %s101_s18  }
   0xd   : > { %p163_p10 = pnand %p524_p6, %p162_p9 }
   0xe   : > { %p198_p11 = scmp.lt.s32.totalorder (!%p163_p10), %s691_s12, 1  ;;  %vm228_vm0 = vcmask (!%p163_p10), 64512   ;;  %v362_v21 = vlaneseq (!%p163_p10)  ;;  %s194_s3 = sand.u32 (!%p163_p10), 1, %s683_s10   ;;  %vm380_vm2 = vcmask (!%p163_p10), 130048   ;;  %v701_v44 = vmov (!%p163_p10), 0.0  }
   0xf   : > { %166 = sbr.rel (%p163_p10) target bundleno = 352 (0x160), region = 28  ;;  %vm554_vm1 = vmpackc.low (!%p163_p10), %vm228_vm0, %vm228_vm0  ;;  %s525_s4 = sshll.u32 (!%p163_p10), %s194_s3, 4 }
  0x10   : > { %v363_v22 = vshrl.u32 (!%p163_p10), %v362_v21, 7  ;;  %v391_v40 = vand.u32 (!%p163_p10), 127, %v362_v21  ;;  %s196_s5 = scalar_lea.vmem (!%p163_p10), [#allocation2], %s525_s4  ;;  %s541_s6 = sshll.u32 (!%p163_p10), %s691_s12, 8 }
  0x11   : > { %s419_s7 = sshll.u32 (!%p163_p10), %s196_s5, 4  ;;  %s798_s16 = scalar_lea.hbm (!%p163_p10), %s852_s2, %s541_s6  ;;  %s800_s7 = int_to_ptr.vmem [resolvable:$true] %s419_s7 }
  0x12   : > { %v364_v24 = vsub.s32 (!%p163_p10), 0, %v363_v22  ;;  %v389_v42 = vadd.s32 (!%p163_p10), 8, %v363_v22  ;;  %vm394_vm3 = vcmp.eq.s32.totalorder (!%p163_p10), %v363_v22, %v391_v40  ;;  %s621_s18 = scalar_lea.vmem (!%p163_p10), %s800_s7, 256  ;;  %s702_s20 = smov (!%p163_p10), [#allocation2]  }
  0x13   : > { %v396_v45 = vsel (!%p163_p10), %vm394_vm3, 0.0001, %v701_v44  ;;  %p622_p12 = scmp.ne.s32.totalorder (!%p163_p10), %s800_s7, %s621_s18 }
  0x14   : > { %vm395_vm4 = vcmp.eq.s32.totalorder (!%p163_p10), %v389_v42, %v391_v40 }
  0x15   : > { %v397_v46 = vsel (!%p163_p10), %vm395_vm4, 0.0001, %v701_v44  ;;  %p623_p13 = pnand (!%p163_p10), %p622_p12, %p760_p4 }
  0x16   : > { %s199_s23 = scalar_select %p198_p11, %s691_s12, 1 }
  0x17   : > { %s804_s12 = scalar_lea.sflag [#allocation3], %s194_s3  ;;  %p624_p0 = pneg %p623_p13 }
  0x18   : > { %s539_s24 = sshll.u32 %s199_s23, 4  ;;  %s625_s23 = sshll.u32 %s702_s20, 4  ;;  %s626_s23 = int_to_ptr.vmem [resolvable:$false] %s625_s23 }
  0x19   : > { %s215_s27 = scalar_lea.vmem %s851_s1, %s539_s24  ;;  %s205_s30 = scalar_lea.vmem %s850_s0, %s539_s24 }
  0x1a   : > { %v222_v0 = vld [vmem:[%s215_s27] sm:$0xff]  ;;  %v223_v1 = vld [vmem:[%s215_s27 + $0x8] sm:$0xff]  ;;  %s627_s24 = scalar_lea.vmem %s626_s23, 512  ;;  %p628_p1 = scmp.lt.s32.totalorder %s800_s7, %s626_s23 }
  0x1b   : > { %v218_v2 = vld [vmem:[%s205_s30] sm:$0xff]  ;;  %v224_v3 = vmul.f32 2.5, %v222_v0  ;;  %v225_v4 = vmul.f32 2.5, %v223_v1  ;;  %v219_v5 = vld [vmem:[%s205_s30 + $0x8] sm:$0xff]  ;;  %p629_p2 = scmp.lt.s32.totalorder %s627_s24, %s621_s18 }
  0x1c   : > { %v220_v6 = vmul.f32 2.5, %v218_v2  ;;  %v221_v7 = vmul.f32 2.5, %v219_v5 }
  0x1d   : > { %v235_v8 = vmul.f32 %v224_v3, %v224_v3  ;;  %v236_v9 = vmul.f32 %v225_v4, %v225_v4  ;;  %v553_v10 = vpack.c.bf16 %v225_v4, %v224_v3  ;;  %p630_p3 = por %p629_p2, %p628_p1 }
  0x1e   : > { %550 = vmatprep.mubr.msk.f32.mxu0 %vm228_vm0, %v220_v6  ;;  %v226_v11 = vmul.f32 %v220_v6, %v220_v6  ;;  %v227_v12 = vmul.f32 %v221_v7, %v221_v7 }
  0x1f   : > { %v237_v13 = vsel %vm228_vm0, %v235_v8, 0.0  ;;  %555 = vmatprep.subr.msk.bf16.mxu0 %vm554_vm1, %v553_v10  ;;  %v240_v15 = vsel %vm228_vm0, %v236_v9, 0.0  ;;  %p631_p5 = pnand %p630_p3, %p624_p0 }
  0x20   : > { %v229_v14 = vsel %vm228_vm0, %v226_v11, 0.0  ;;  %238 = vadd.xlane.f32.xlu0 %v237_v13  ;;  %558 = vmatpush3.bf16.xpose.msk.msra.mxu0 %vm554_vm1, %v553_v10  ;;  %v232_v16 = vsel %vm228_vm0, %v227_v12, 0.0 }
  0x21   : > { %230 = vadd.xlane.f32.xlu1 %v229_v14 }
  0x24   : > { %241 = vadd.xlane.f32.xlu0 %v240_v15 }
  0x25   : > { %233 = vadd.xlane.f32.xlu1 %v232_v16 }
  0x27   : > { %551 = vmatmul.mubr.msk.f32.vlgmr.msra.gmra.mrb[0].mxu0 %vm228_vm0, %v221_v7 }
  0xad   : > { %v239_v17 = vpop.xlane.xlu0 %238 }
  0xae   : > { %330 = vxpose.xlu0.b32.start [1/2] (short) (narrow) %v239_v17, 8  ;;  %v231_v23 = vpop.xlane.xlu1 %230 }
  0xb1   : > { %v242_v18 = vpop.xlane.xlu0 %241 }
  0xb2   : > { %331 = vxpose.xlu0.b32.end [2/2] (short) (narrow) %v242_v18, 8  ;;  %v234_v26 = vpop.xlane.xlu1 %233 }
  0xfa   : > { %v552_v19 = vpop.f32.mrb[0].mxu0 }
  0xfb   : > { %v321_v20 = vpop.f32.mrb[1].mxu0  ;;  %v369_v28 = vmul.f32 2.0, %v552_v19 }
  0xfc   : > { %v368_v29 = vmul.f32 2.0, %v321_v20 }
 0x12e   : > { %v346_v25 = vpop.trf.xlu0 }
 0x12f   : > { %v365_v27 = vrot.slane %v346_v25, %v364_v24 }
 0x131   : > { %v366_v30 = vadd.f32 %v365_v27, %v231_v23  ;;  %v367_v31 = vadd.f32 %v365_v27, %v234_v26 }
 0x133   : > { %v370_v32 = vsub.f32 %v366_v30, %v368_v29  ;;  %v371_v33 = vsub.f32 %v367_v31, %v369_v28 }
 0x135   : > { %v372_v34 = vmax.f32 %v370_v32, 0.0  ;;  %v373_v35 = vmax.f32 %v371_v33, 0.0 }
 0x137   : > { %v374_v36 = vmul.f32 -0.5, %v372_v34  ;;  %v375_v37 = vmul.f32 -0.5, %v373_v35 }
 0x139   : > { %v376_v38 = vmul.f32 1.442695, %v374_v36  ;;  %v378_v39 = vmul.f32 1.442695, %v375_v37 }
 0x13b   : > { %617 = vpow2.f32 %v376_v38 }
 0x13c   : > { %619 = vpow2.f32 %v378_v39 }
 0x145   : > { %v618_v41 = vpop.eup %617 }
 0x146   : > { %v620_v43 = vpop.eup %619  ;;  %381 = vst.msk [vmem:[%s196_s5] sm:$0xff] %vm380_vm2, %v618_v41 }
 0x147   : > { %382 = vst.msk [vmem:[%s196_s5 + $0x8] sm:$0xff] %vm380_vm2, %v620_v43 }
 0x14d   : > { %v392_v47 = vld [vmem:[%s196_s5] sm:$0xff] }
 0x14e   : > { %v393_v48 = vld [vmem:[%s196_s5 + $0x8] sm:$0xff]  ;;  %v398_v49 = vadd.f32 %v396_v45, %v392_v47 }
 0x14f   : > { %v399_v50 = vadd.f32 %v397_v46, %v393_v48 }
 0x150   : > { %400 = vst.msk [vmem:[%s196_s5] sm:$0xff] %vm380_vm2, %v398_v49 }
 0x151   : > { %401 = vst.msk [vmem:[%s196_s5 + $0x8] sm:$0xff] %vm380_vm2, %v399_v50 }
 0x152   : > { %634 = shalt.err (!%p631_p5)
}
 0x153   : > { %s635_s25 = scalar_lea.hbm %s798_s16, 256  ;;  %s639_s28 = scalar_lea.hbm %s852_s2, 512 }
 0x154   : > { %p636_p6 = scmp.ne.s32.totalorder %s798_s16, %s635_s25  ;;  %p640_p10 = scmp.lt.u32.totalorder %s798_s16, %s852_s2 }
 0x155   : > { %p641_p11 = scmp.lt.u32.totalorder %s639_s28, %s635_s25  ;;  %p643_p13 = scmp.lt.u32.totalorder %s635_s25, %s798_s16 }
 0x156   : > { %p637_p7 = pnand %p636_p6, %p760_p4 }
 0x157   : > { %p642_p12 = por %p641_p11, %p640_p10 }
 0x158   : > { %p638_p9 = pneg %p637_p7 }
 0x159   : > { %p644_p0 = por %p643_p13, %p642_p12 }
 0x15b   : > { %p645_p1 = pnand %p644_p0, %p638_p9 }
 0x15d   : > { %648 = shalt.err (!%p645_p1)
}
 0x15e   : > { %s703_s3 = smov 128   ;;  %s704_s4 = smov 8  }
 0x15f   : > { %559 = dma.vmem_to_hbm [thread:$0]  (%p760_p4), %s800_s7, 256, %s798_s16, %s804_s12, %s703_s3, %s703_s3, %s704_s4  }
 0x160 PF: > { %p565_p2 = scmp.ge.s32.totalorder %s699_s14, 2  ;;  %s434_s5 = sand.u32 1, %s679_s9  }
 0x161   : > { %s435_s6 = scalar_lea.sflag [#allocation3], %s434_s5 }
 0x162   : > { %p562_p3 = pnand %p565_p2, %p767_p8 }
 0x164   : > { %674 = dma.done.wait (!%p562_p3), %s435_s6, 256  }
 0x165   : > { %676 = vsyncadd (!%p562_p3), %s435_s6, 4294967040  ;;  %s15_s14 = sadd.s32 1, %s699_s14   ;;  %s855_s9 = smov %s683_s10 }
 0x166   : > { %p12_p5 = scmp.ge.s32.totalorder %s15_s14, 4   ;;  %s856_s10 = smov %s687_s11 }
 0x167   : > { %s857_s11 = smov %s773_s22  ;;  %s858_s12 = smov %s695_s13 }
 0x168   : > { %s859_s13 = smov %s861_s17  ;;  %14 = sbr.rel (!%p12_p5) target bundleno = 4 (0x4), region = 70 }
 0x16f   :  { %440 = vsyncpa [#allocation3], 1 }
 0x170   :  { %442 = vsyncpa [#allocation3 + $0x1], 1 }

</bundles_post_ra>
